<compile_context>
chip_gen: v5e
topology: v5e:2x2
jax: 0.10.0
libtpu: 0.0.40
codegen_flags: <defaults>
</compile_context>

<pallas_src>
import functools

import jax
import jax.numpy as jnp
import numpy as np
from jax import lax
from jax.experimental import pallas as pl
from jax.experimental.pallas import tpu as pltpu


def _round_up(n, m):
    return ((n + m - 1) // m) * m


def _ldam_ccbl_kernel(tgt_smem, x_ref, tgtv_ref, caug_hbm, out_ref,
                      cgather, sems, ladm_acc, ccbl_acc,
                      *, s: float, lam: float, true_b: int, tb: int, c: int):
    i = pl.program_id(0)

    # ---- init accumulators on the first tile --------------------------------
    @pl.when(i == 0)
    def _():
        ladm_acc[...] = jnp.zeros_like(ladm_acc)
        ccbl_acc[...] = jnp.zeros_like(ccbl_acc)

    base = i * tb

    # ---- DMA row-gather of [centers | m_list | class_weights][target] -------
    def _issue(r, carry):
        row = tgt_smem[base + r]
        pltpu.make_async_copy(caug_hbm.at[row], cgather.at[r], sems.at[r]).start()
        return carry
    lax.fori_loop(0, tb, _issue, 0)

    def _wait(r, carry):
        pltpu.make_async_copy(caug_hbm.at[0], cgather.at[r], sems.at[r]).wait()
        return carry
    lax.fori_loop(0, tb, _wait, 0)

    # ---- load tile (cast to f32 in VMEM; inputs may be bf16 in HBM) ----------
    x = x_ref[...].astype(jnp.float32)            # [TB, C]
    tgt_col = tgtv_ref[...]                       # [TB, 1] int32
    caug = cgather[...].astype(jnp.float32)       # [TB, C+2]
    centers_b = caug[:, :c]                       # [TB, C]  centers[target]
    batch_m = caug[:, c:c + 1]                    # [TB, 1]  m_list[target]
    cw = caug[:, c + 1:c + 2]                     # [TB, 1]  class_weights[target]

    cols = lax.broadcasted_iota(jnp.int32, (tb, c), 1)
    tmask = cols == tgt_col                       # one-hot(target) as a bool mask

    # x_t = x[target]  (single masked lane reduction, reused by both branches)
    x_t = jnp.sum(jnp.where(tmask, x, 0.0), axis=1, keepdims=True)   # [TB, 1]

    # valid-row mask for the padded tail tile
    rows = lax.broadcasted_iota(jnp.int32, (tb, 1), 0)
    rmask = ((base + rows) < true_b).astype(jnp.float32)             # [TB, 1]

    # ---- LDAM branch: cross_entropy(s * output, target), reduction='mean' ----
    if s == 1.0:
        # single full exp pass; logits logsumexp via a one-element correction
        max_x = jnp.max(x, axis=1, keepdims=True)
        ex = jnp.exp(x - max_x)
        s_x = jnp.sum(ex, axis=1, keepdims=True)
        e_t = jnp.exp(x_t - max_x)
        e_tm = jnp.exp(x_t - batch_m - max_x)
        s_l = s_x - e_t + e_tm
        lse_x = max_x + jnp.log(s_x)              # logsumexp(x)
        lse_l = max_x + jnp.log(s_l)              # logsumexp(logits)
        ladm_per = lse_l - (x_t - batch_m)
    else:
        logits = s * jnp.where(tmask, x - batch_m, x)
        max_l = jnp.max(logits, axis=1, keepdims=True)
        lse_l = max_l + jnp.log(jnp.sum(jnp.exp(logits - max_l),
                                        axis=1, keepdims=True))
        ladm_per = lse_l - s * (x_t - batch_m)
        max_x = jnp.max(x, axis=1, keepdims=True)
        lse_x = max_x + jnp.log(jnp.sum(jnp.exp(x - max_x),
                                        axis=1, keepdims=True))

    ce_per = lse_x - x_t                          # CrossEntropyLoss(reduction='none')

    # ---- CCBL branch ---------------------------------------------------------
    diff = x - centers_b
    dist = jnp.sqrt(jnp.sum(diff * diff, axis=1, keepdims=True))     # [TB, 1]
    pt = jnp.exp(-dist * cw)
    cw_safe = jnp.maximum(cw, 1e-30)              # guard log(); cw > 0 in practice
    ccbl_per = jnp.exp((1.0 - pt) * jnp.log(cw_safe)) * ce_per       # cw**(1-pt) * CE

    # ---- accumulate masked per-sample sums -----------------------------------
    ladm_acc[...] += jnp.sum(ladm_per * rmask, axis=0, keepdims=True)
    ccbl_acc[...] += jnp.sum(ccbl_per * rmask, axis=0, keepdims=True)

    # ---- finalize on the last tile -------------------------------------------
    @pl.when(i == pl.num_programs(0) - 1)
    def _():
        inv_b = 1.0 / float(true_b)
        out_ref[...] = (lam * ccbl_acc[...] + (1.0 - lam) * ladm_acc[...]) * inv_b


def ldam_ccbl_loss(x, target, m_list, class_weights, centers, *,
                   s=1.0, lam=0.5, block_b=128):
    """LDAM_CCBL forward (default reduction='mean').  x: [B, C], target: [B] int."""
    # TODO(synk): reduction='sum' / 'none' branches of the module are not implemented.
    B, C = x.shape

    # Batch tile: multiple of 8 sublanes, capped so an f32 x tile stays <= ~2 MiB
    # (tile double-buffering + gather scratch then fit the ~32 MiB scoped VMEM
    #  budget on every generation, incl. v7x's 64 MiB physical VMEM).
    max_rows = max(8, ((2 * 1024 * 1024) // (4 * max(C, 1))) // 8 * 8)
    tb = int(min(block_b, max_rows, _round_up(B, 8)))
    bp = _round_up(B, tb)
    num_tiles = bp // tb

    # native-dtype x (no wrapper up-cast); pad batch to a tile multiple
    x_p = x if bp == B else jnp.pad(x, ((0, bp - B), (0, 0)))
    tgt = target.astype(jnp.int32)
    tgt_p = tgt if bp == B else jnp.pad(tgt, (0, bp - B))
    tgt2d = tgt_p.reshape(bp, 1)

    # [centers | m_list | class_weights]: one DMA row gather fetches all three
    caug = jnp.concatenate(
        [centers.astype(jnp.float32),
         m_list.reshape(C, 1).astype(jnp.float32),
         class_weights.reshape(C, 1).astype(jnp.float32)], axis=1)   # [C, C+2]

    kernel = functools.partial(_ldam_ccbl_kernel, s=float(s), lam=float(lam),
                               true_b=B, tb=tb, c=C)

    grid_spec = pltpu.PrefetchScalarGridSpec(
        num_scalar_prefetch=1,                                  # targets -> SMEM
        grid=(num_tiles,),
        in_specs=[
            pl.BlockSpec((tb, C), lambda i, tgt: (i, 0)),       # x tile (pipelined)
            pl.BlockSpec((tb, 1), lambda i, tgt: (i, 0)),       # target column tile
            pl.BlockSpec(memory_space=pl.ANY),                  # centers_aug stays in HBM
        ],
        out_specs=pl.BlockSpec((1, 1), lambda i, tgt: (0, 0)),
        scratch_shapes=[
            pltpu.VMEM((tb, C + 2), jnp.float32),               # gathered rows
            pltpu.SemaphoreType.DMA((tb,)),                     # per-row DMA sems
            pltpu.VMEM((1, 1), jnp.float32),                    # ladm sum accumulator
            pltpu.VMEM((1, 1), jnp.float32),                    # ccbl sum accumulator
        ],
    )

    out = pl.pallas_call(
        kernel,
        out_shape=jax.ShapeDtypeStruct((1, 1), jnp.float32),
        grid_spec=grid_spec,
        compiler_params=pltpu.CompilerParams(
            # batch axis accumulates into one resident output block -> reduction.
            # TODO(synk): shard batch tiles across v7x's 2 TensorCores with
            # per-core partial sums and a final cross-core reduce.
            dimension_semantics=("arbitrary",),
            vmem_limit_bytes=32 * 1024 * 1024,
        ),
    )(tgt_p, x_p, tgt2d, caug)
    return out[0, 0]


def _reference(x, target, m_list, class_weights, centers, s, lam):
    onehot = jax.nn.one_hot(target, x.shape[1], dtype=jnp.float32)
    batch_m = (onehot * m_list[None, :]).sum(1, keepdims=True)
    logits = s * jnp.where(onehot > 0, x - batch_m, x)
    ladm = jnp.mean(jax.scipy.special.logsumexp(logits, axis=1)
                    - (onehot * logits).sum(1))
    centers_b = centers[target]
    dist = jnp.sqrt(((x - centers_b) ** 2).sum(1))
    cw = class_weights[target]
    pt = jnp.exp(-dist * cw)
    ce = jax.scipy.special.logsumexp(x, axis=1) - (onehot * x).sum(1)
    ccbl = jnp.mean(cw ** (1.0 - pt) * ce)
    return lam * ccbl + (1.0 - lam) * ladm


if __name__ == "__main__":
    key = jax.random.PRNGKey(0)
    B, C = 10, 4                    # B deliberately not a tile multiple -> tail mask
    max_m, s, Lambda = 0.5, 1.0, 0.7

    # Deterministic synthetic "module params" (shapes from __init__).
    cls_num_list = np.array([100.0, 60.0, 30.0, 10.0], dtype=np.float32)
    m_list_np = 1.0 / np.sqrt(np.sqrt(cls_num_list))
    m_list_np = m_list_np * (max_m / np.max(m_list_np))
    class_weights_np = (cls_num_list.sum() / (C * cls_num_list)).astype(np.float32)

    k1, k2, k3 = jax.random.split(key, 3)
    x = jax.random.normal(k1, (B, C), dtype=jnp.float32)
    target = jax.random.randint(k2, (B,), 0, C, dtype=jnp.int32)
    centers = jax.random.normal(k3, (C, C), dtype=jnp.float32)  # nn.Parameter(randn)

    m_list = jnp.asarray(m_list_np)
    class_weights = jnp.asarray(class_weights_np)

    loss = ldam_ccbl_loss(x, target, m_list, class_weights, centers, s=s, lam=Lambda)
    loss = jax.block_until_ready(loss)

    ref = _reference(x, target, m_list, class_weights, centers, s, Lambda)
    np.testing.assert_allclose(np.asarray(loss), np.asarray(ref), rtol=1e-4, atol=1e-5)

    print("KERNEL_OK")
</pallas_src>

<mosaic_0001>
module attributes {stable_mosaic.version = 11 : i64} {
  func.func @_ldam_ccbl_kernel(%arg0: i32, %arg1: memref<16xi32, #tpu.memory_space<smem>>, %arg2: memref<16x4xf32, #tpu.memory_space<vmem>>, %arg3: memref<16x1xi32, #tpu.memory_space<vmem>>, %arg4: memref<4x6xf32, #tpu.memory_space<any>>, %arg5: memref<1x1xf32, #tpu.memory_space<vmem>>, %arg6: memref<16x6xf32, #tpu.memory_space<vmem>>, %arg7: memref<16x!tpu.dma_semaphore, #tpu.memory_space<semaphore_mem>>, %arg8: memref<1x1xf32, #tpu.memory_space<vmem>>, %arg9: memref<1x1xf32, #tpu.memory_space<vmem>>) attributes {dimension_semantics = [#tpu.dimension_semantics<arbitrary>], iteration_bounds = array<i64: 1>, scalar_prefetch = 1 : i64, scratch_operands = 4 : i64, tpu.core_type = #tpu.core_type<tc>, window_params = [{transform_indices = @transform_0, window_bounds = array<i64: 16, 4>}, {transform_indices = @transform_1, window_bounds = array<i64: 16, 1>}, {}, {pipeline_mode = #tpu.pipeline_mode<synchronous>, transform_indices = @transform_3, window_bounds = array<i64: 1, 1>}]} {
    %c0_i32 = arith.constant 0 : i32
    %0 = arith.cmpi eq, %arg0, %c0_i32 : i32
    %1 = arith.extui %0 : i1 to i32
    %c0_i32_0 = arith.constant 0 : i32
    %2 = arith.cmpi ne, %1, %c0_i32_0 : i32
    scf.if %2 {
      %cst_32 = arith.constant 0.000000e+00 : f32
      %79 = vector.broadcast %cst_32 : f32 to vector<1x1xf32>
      %c0_33 = arith.constant 0 : index
      %c0_34 = arith.constant 0 : index
      %80 = vector.load %arg8[%c0_33, %c0_34] : memref<1x1xf32, #tpu.memory_space<vmem>>, vector<1x1xf32>
      tpu.vector_store %arg8[%c0_33, %c0_34], %79 {strides = array<i32>} : memref<1x1xf32, #tpu.memory_space<vmem>>, vector<1x1xf32>,
      %cst_35 = arith.constant 0.000000e+00 : f32
      %81 = vector.broadcast %cst_35 : f32 to vector<1x1xf32>
      %c0_36 = arith.constant 0 : index
      %c0_37 = arith.constant 0 : index
      %82 = vector.load %arg9[%c0_36, %c0_37] : memref<1x1xf32, #tpu.memory_space<vmem>>, vector<1x1xf32>
      tpu.vector_store %arg9[%c0_36, %c0_37], %81 {strides = array<i32>} : memref<1x1xf32, #tpu.memory_space<vmem>>, vector<1x1xf32>,
    } else {
    }
    %c16_i32 = arith.constant 16 : i32
    %3 = arith.muli %arg0, %c16_i32 : i32
    %c0_i32_1 = arith.constant 0 : i32
    %c16_i32_2 = arith.constant 16 : i32
    %4 = arith.addi %c0_i32_1, %c16_i32_2 : i32
    %c1_i32 = arith.constant 1 : i32
    scf.for %arg10 = %c0_i32_1 to %4 step %c1_i32  : i32 {
      %79 = arith.addi %3, %arg10 : i32
      %80 = arith.index_cast %79 : i32 to index
      %81 = memref.load %arg1[%80] : memref<16xi32, #tpu.memory_space<smem>>
      %c0_i32_32 = arith.constant 0 : i32
      %82 = tpu.memref_slice %arg4[%81, %c0_i32_32] : memref<4x6xf32, #tpu.memory_space<any>> -> memref<1x6xf32, #tpu.memory_space<any>>
      %83 = tpu.memref_squeeze %82 : memref<1x6xf32, #tpu.memory_space<any>> -> memref<6xf32, #tpu.memory_space<any>>
      %c0_i32_33 = arith.constant 0 : i32
      %84 = tpu.memref_slice %arg6[%arg10, %c0_i32_33] : memref<16x6xf32, #tpu.memory_space<vmem>> -> memref<1x6xf32, #tpu.memory_space<vmem>>
      %85 = tpu.memref_squeeze %84 : memref<1x6xf32, #tpu.memory_space<vmem>> -> memref<6xf32, #tpu.memory_space<vmem>>
      %86 = tpu.memref_slice %arg7[%arg10] : memref<16x!tpu.dma_semaphore, #tpu.memory_space<semaphore_mem>> -> memref<1x!tpu.dma_semaphore, #tpu.memory_space<semaphore_mem>>
      %87 = tpu.memref_squeeze %86 : memref<1x!tpu.dma_semaphore, #tpu.memory_space<semaphore_mem>> -> memref<!tpu.dma_semaphore, #tpu.memory_space<semaphore_mem>>
      tpu.enqueue_dma source(%83 : memref<6xf32, #tpu.memory_space<any>>) target(%85 : memref<6xf32, #tpu.memory_space<vmem>>) target_semaphore(%87 : memref<!tpu.dma_semaphore, #tpu.memory_space<semaphore_mem>>)
    }
    %c16_i32_3 = arith.constant 16 : i32
    %c0_i32_4 = arith.constant 0 : i32
    %c16_i32_5 = arith.constant 16 : i32
    %5 = arith.addi %c0_i32_4, %c16_i32_5 : i32
    %c1_i32_6 = arith.constant 1 : i32
    scf.for %arg10 = %c0_i32_4 to %5 step %c1_i32_6  : i32 {
      %c0_i32_32 = arith.constant 0 : i32
      %c0_i32_33 = arith.constant 0 : i32
      %79 = tpu.memref_slice %arg4[%c0_i32_32, %c0_i32_33] : memref<4x6xf32, #tpu.memory_space<any>> -> memref<1x6xf32, #tpu.memory_space<any>>
      %80 = tpu.memref_squeeze %79 : memref<1x6xf32, #tpu.memory_space<any>> -> memref<6xf32, #tpu.memory_space<any>>
      %c0_i32_34 = arith.constant 0 : i32
      %81 = tpu.memref_slice %arg6[%arg10, %c0_i32_34] : memref<16x6xf32, #tpu.memory_space<vmem>> -> memref<1x6xf32, #tpu.memory_space<vmem>>
      %82 = tpu.memref_squeeze %81 : memref<1x6xf32, #tpu.memory_space<vmem>> -> memref<6xf32, #tpu.memory_space<vmem>>
      %83 = tpu.memref_slice %arg7[%arg10] : memref<16x!tpu.dma_semaphore, #tpu.memory_space<semaphore_mem>> -> memref<1x!tpu.dma_semaphore, #tpu.memory_space<semaphore_mem>>
      %84 = tpu.memref_squeeze %83 : memref<1x!tpu.dma_semaphore, #tpu.memory_space<semaphore_mem>> -> memref<!tpu.dma_semaphore, #tpu.memory_space<semaphore_mem>>
      tpu.wait_dma2 semaphore(%84 : memref<!tpu.dma_semaphore, #tpu.memory_space<semaphore_mem>>) src(%80 : memref<6xf32, #tpu.memory_space<any>>) dst(%82 : memref<6xf32, #tpu.memory_space<vmem>>)
    }
    %c16_i32_7 = arith.constant 16 : i32
    %c0 = arith.constant 0 : index
    %c0_8 = arith.constant 0 : index
    %6 = vector.load %arg2[%c0, %c0_8] : memref<16x4xf32, #tpu.memory_space<vmem>>, vector<16x4xf32>
    %c0_9 = arith.constant 0 : index
    %c0_10 = arith.constant 0 : index
    %7 = vector.load %arg3[%c0_9, %c0_10] : memref<16x1xi32, #tpu.memory_space<vmem>>, vector<16x1xi32>
    %c0_11 = arith.constant 0 : index
    %c0_12 = arith.constant 0 : index
    %8 = vector.load %arg6[%c0_11, %c0_12] : memref<16x6xf32, #tpu.memory_space<vmem>>, vector<16x6xf32>
    %9 = vector.extract_strided_slice %8 {offsets = [0, 0], sizes = [16, 4], strides = [1, 1]} : vector<16x6xf32> to vector<16x4xf32>
    %10 = vector.extract_strided_slice %8 {offsets = [0, 4], sizes = [16, 1], strides = [1, 1]} : vector<16x6xf32> to vector<16x1xf32>
    %11 = vector.extract_strided_slice %8 {offsets = [0, 5], sizes = [16, 1], strides = [1, 1]} : vector<16x6xf32> to vector<16x1xf32>
    %12 = tpu.iota {dimensions = array<i32: 1>} : vector<16x4xi32>
    %13 = vector.broadcast %7 : vector<16x1xi32> to vector<16x4xi32>
    %14 = arith.cmpi eq, %12, %13 : vector<16x4xi32>
    %cst = arith.constant 0.000000e+00 : f32
    %15 = vector.broadcast %cst : f32 to vector<16x4xf32>
    %16 = arith.select %14, %6, %15 : vector<16x4xi1>, vector<16x4xf32>
    %cst_13 = arith.constant dense<0.000000e+00> : vector<16xf32>
    %17 = vector.multi_reduction <add>, %16, %cst_13 [1] : vector<16x4xf32> to vector<16xf32>
    %18 = vector.shape_cast %17 : vector<16xf32> to vector<16x1xf32>
    %19 = tpu.iota {dimensions = array<i32: 0>} : vector<16x1xi32>
    %20 = vector.broadcast %3 : i32 to vector<16x1xi32>
    %21 = arith.addi %20, %19 : vector<16x1xi32>
    %c10_i32 = arith.constant 10 : i32
    %22 = vector.broadcast %c10_i32 : i32 to vector<16x1xi32>
    %23 = arith.cmpi slt, %21, %22 : vector<16x1xi32>
    %24 = arith.extui %23 : vector<16x1xi1> to vector<16x1xi32>
    %25 = arith.sitofp %24 : vector<16x1xi32> to vector<16x1xf32>
    %cst_14 = arith.constant dense<0xFF800000> : vector<16xf32>
    %26 = vector.multi_reduction <maximumf>, %6, %cst_14 [1] : vector<16x4xf32> to vector<16xf32>
    %27 = vector.shape_cast %26 : vector<16xf32> to vector<16x1xf32>
    %28 = vector.broadcast %27 : vector<16x1xf32> to vector<16x4xf32>
    %29 = arith.subf %6, %28 : vector<16x4xf32>
    %30 = math.exp %29 : vector<16x4xf32>
    %cst_15 = arith.constant dense<0.000000e+00> : vector<16xf32>
    %31 = vector.multi_reduction <add>, %30, %cst_15 [1] : vector<16x4xf32> to vector<16xf32>
    %32 = vector.shape_cast %31 : vector<16xf32> to vector<16x1xf32>
    %33 = arith.subf %18, %27 : vector<16x1xf32>
    %34 = math.exp %33 : vector<16x1xf32>
    %35 = arith.subf %18, %10 : vector<16x1xf32>
    %36 = arith.subf %35, %27 : vector<16x1xf32>
    %37 = math.exp %36 : vector<16x1xf32>
    %38 = arith.subf %32, %34 : vector<16x1xf32>
    %39 = arith.addf %38, %37 : vector<16x1xf32>
    %40 = math.log %32 : vector<16x1xf32>
    %41 = arith.addf %27, %40 : vector<16x1xf32>
    %42 = math.log %39 : vector<16x1xf32>
    %43 = arith.addf %27, %42 : vector<16x1xf32>
    %44 = arith.subf %18, %10 : vector<16x1xf32>
    %45 = arith.subf %43, %44 : vector<16x1xf32>
    %46 = arith.subf %41, %18 : vector<16x1xf32>
    %47 = arith.subf %6, %9 : vector<16x4xf32>
    %48 = arith.mulf %47, %47 : vector<16x4xf32>
    %cst_16 = arith.constant dense<0.000000e+00> : vector<16xf32>
    %49 = vector.multi_reduction <add>, %48, %cst_16 [1] : vector<16x4xf32> to vector<16xf32>
    %50 = vector.shape_cast %49 : vector<16xf32> to vector<16x1xf32>
    %51 = math.sqrt %50 : vector<16x1xf32>
    %cst_17 = arith.constant 0.000000e+00 : f32
    %52 = vector.broadcast %cst_17 : f32 to vector<16x1xf32>
    %53 = arith.subf %52, %51 : vector<16x1xf32>
    %54 = arith.mulf %53, %11 : vector<16x1xf32>
    %55 = math.exp %54 : vector<16x1xf32>
    %cst_18 = arith.constant 1.000000e-30 : f32
    %56 = vector.broadcast %cst_18 : f32 to vector<16x1xf32>
    %57 = arith.maximumf %11, %56 : vector<16x1xf32>
    %cst_19 = arith.constant 1.000000e+00 : f32
    %58 = vector.broadcast %cst_19 : f32 to vector<16x1xf32>
    %59 = arith.subf %58, %55 : vector<16x1xf32>
    %60 = math.log %57 : vector<16x1xf32>
    %61 = arith.mulf %59, %60 : vector<16x1xf32>
    %62 = math.exp %61 : vector<16x1xf32>
    %63 = arith.mulf %62, %46 : vector<16x1xf32>
    %c0_20 = arith.constant 0 : index
    %c0_21 = arith.constant 0 : index
    %64 = vector.load %arg8[%c0_20, %c0_21] : memref<1x1xf32, #tpu.memory_space<vmem>>, vector<1x1xf32>
    %65 = arith.mulf %45, %25 : vector<16x1xf32>
    %cst_22 = arith.constant dense<0.000000e+00> : vector<1xf32>
    %66 = vector.multi_reduction <add>, %65, %cst_22 [0] : vector<16x1xf32> to vector<1xf32>
    %67 = vector.shape_cast %66 : vector<1xf32> to vector<1x1xf32>
    %68 = arith.addf %64, %67 : vector<1x1xf32>
    %c0_23 = arith.constant 0 : index
    %c0_24 = arith.constant 0 : index
    %69 = vector.load %arg8[%c0_23, %c0_24] : memref<1x1xf32, #tpu.memory_space<vmem>>, vector<1x1xf32>
    tpu.vector_store %arg8[%c0_23, %c0_24], %68 {strides = array<i32>} : memref<1x1xf32, #tpu.memory_space<vmem>>, vector<1x1xf32>,
    %c0_25 = arith.constant 0 : index
    %c0_26 = arith.constant 0 : index
    %70 = vector.load %arg9[%c0_25, %c0_26] : memref<1x1xf32, #tpu.memory_space<vmem>>, vector<1x1xf32>
    %71 = arith.mulf %63, %25 : vector<16x1xf32>
    %cst_27 = arith.constant dense<0.000000e+00> : vector<1xf32>
    %72 = vector.multi_reduction <add>, %71, %cst_27 [0] : vector<16x1xf32> to vector<1xf32>
    %73 = vector.shape_cast %72 : vector<1xf32> to vector<1x1xf32>
    %74 = arith.addf %70, %73 : vector<1x1xf32>
    %c0_28 = arith.constant 0 : index
    %c0_29 = arith.constant 0 : index
    %75 = vector.load %arg9[%c0_28, %c0_29] : memref<1x1xf32, #tpu.memory_space<vmem>>, vector<1x1xf32>
    tpu.vector_store %arg9[%c0_28, %c0_29], %74 {strides = array<i32>} : memref<1x1xf32, #tpu.memory_space<vmem>>, vector<1x1xf32>,
    %c0_i32_30 = arith.constant 0 : i32
    %76 = arith.cmpi eq, %arg0, %c0_i32_30 : i32
    %77 = arith.extui %76 : i1 to i32
    %c0_i32_31 = arith.constant 0 : i32
    %78 = arith.cmpi ne, %77, %c0_i32_31 : i32
    scf.if %78 {
      %c0_32 = arith.constant 0 : index
      %c0_33 = arith.constant 0 : index
      %79 = vector.load %arg9[%c0_32, %c0_33] : memref<1x1xf32, #tpu.memory_space<vmem>>, vector<1x1xf32>
      %cst_34 = arith.constant 0.699999988 : f32
      %80 = vector.broadcast %cst_34 : f32 to vector<1x1xf32>
      %81 = arith.mulf %80, %79 : vector<1x1xf32>
      %c0_35 = arith.constant 0 : index
      %c0_36 = arith.constant 0 : index
      %82 = vector.load %arg8[%c0_35, %c0_36] : memref<1x1xf32, #tpu.memory_space<vmem>>, vector<1x1xf32>
      %cst_37 = arith.constant 3.000000e-01 : f32
      %83 = vector.broadcast %cst_37 : f32 to vector<1x1xf32>
      %84 = arith.mulf %83, %82 : vector<1x1xf32>
      %85 = arith.addf %81, %84 : vector<1x1xf32>
      %cst_38 = arith.constant 1.000000e-01 : f32
      %86 = vector.broadcast %cst_38 : f32 to vector<1x1xf32>
      %87 = arith.mulf %85, %86 : vector<1x1xf32>
      %c0_39 = arith.constant 0 : index
      %c0_40 = arith.constant 0 : index
      %88 = vector.load %arg5[%c0_39, %c0_40] : memref<1x1xf32, #tpu.memory_space<vmem>>, vector<1x1xf32>
      tpu.vector_store %arg5[%c0_39, %c0_40], %87 {strides = array<i32>} : memref<1x1xf32, #tpu.memory_space<vmem>>, vector<1x1xf32>,
    } else {
    }
    return
  }
  func.func @transform_0(%arg0: i32, %arg1: memref<16xi32, #tpu.memory_space<smem>>) -> (i32, i32) {
    %c0_i32 = arith.constant 0 : i32
    %c0_i32_0 = arith.constant 0 : i32
    return %arg0, %c0_i32 : i32, i32
  }
  func.func @transform_1(%arg0: i32, %arg1: memref<16xi32, #tpu.memory_space<smem>>) -> (i32, i32) {
    %c0_i32 = arith.constant 0 : i32
    %c0_i32_0 = arith.constant 0 : i32
    return %arg0, %c0_i32 : i32, i32
  }
  func.func @transform_3(%arg0: i32, %arg1: memref<16xi32, #tpu.memory_space<smem>>) -> (i32, i32) {
    %c0_i32 = arith.constant 0 : i32
    %c0_i32_0 = arith.constant 0 : i32
    %c0_i32_1 = arith.constant 0 : i32
    return %c0_i32, %c0_i32_0 : i32, i32
  }
}

</mosaic_0001>

<bundles_post_ra>
// kernel: tpu_custom_call.1
= control target key start
LH: loop header
LB: loop body
LE: loop exit
PB: predicated region body
PF: predicated region fallthrough
CT: control target
= control target key end

     0   :  { %s560_s18 = smov [#allocation7]   ;;  %s674_s0 = inlined_call_operand.vmem [shape: s32[16], index: 0, kind: input, shape index: {}]   ;;  %s675_s1 = inlined_call_operand.vmem [shape: f32[16,4], index: 1, kind: input, shape index: {}]   ;;  %s676_s2 = inlined_call_operand.vmem [shape: s32[16,1], index: 2, kind: input, shape index: {}]   ;;  %s677_s3 = inlined_call_operand.vmem [shape: f32[4,6], index: 3, kind: input, shape index: {}]   ;;  %s678_s4 = inlined_call_operand.hbm [shape: f32[1,1], index: 4, kind: output, shape index: {}]  }
   0x1   :  { %s10_s17 = sshll.u32 %s674_s0, 4  ;;  %s11_s17 = int_to_ptr.vmem [resolvable:$true] %s10_s17 }
   0x2   :  { %13 = dma.vmem_to_smem %s11_s17, 16, %s560_s18, [#allocation6] }
   0x3   :  { %546 = dma.done.wait [#allocation6], 16 }
   0x4   :  { %547 = vsyncadd [#allocation6], 4294967280 }
   0x5   :  { %16 = sfence }
   0x6   :  { %17 = vsyncpa [#allocation9], 0  ;;  %vm26_vm0 = vcmask 0   ;;  %v561_v0 = vmov 0.0   ;;  %s552_s19 = smov 0  }
   0x7   :  { %27 = vst.msk [vmem:[#allocation4] sm:$0x1] %vm26_vm0, %v561_v0 }
   0x8   :  { %28 = vst.msk [vmem:[#allocation5] sm:$0x1] %vm26_vm0, %v561_v0 }
   0x9 LB: > { %s37_s0 = sld [smem:[#allocation7 + %s554_s19]]  ;;  %s39_s23 = scalar_lea.vmem [#allocation2], %s554_s19  ;;  %s554_s19 = sphi %s552_s19, %s35_s19  }
   0xa   : > { %s40_s24 = scalar_lea.sflag [#allocation3], %s554_s19 }
   0xf   : > { %s38_s22 = scalar_lea.vmem %s677_s3, %s37_s0 }
  0x10   : > { %v55_v1 = vld [vmem:[%s38_s22] sm:$0x1] }
  0x11   : > { %56 = vst [vmem:[%s39_s23] sm:$0x1] %v55_v1 }
  0x12   : > { %74 = vsyncadd %s40_s24, 16  ;;  %s35_s19 = sadd.s32 1, %s554_s19  }
  0x13   : > { %p32_p0 = scmp.ge.s32.totalorder %s35_s19, 16  }
  0x14   :  { %s556_s25 = smov (%p32_p0), 0  }
  0x15   :  { %34 = sbr.rel (!%p32_p0) target bundleno = 9 (0x9), region = 103 }
  0x1a LB: > { %s81_s26 = scalar_lea.sflag [#allocation3], %s558_s25  ;;  %s558_s25 = sphi %s556_s25, %s80_s25  }
  0x1b   : > { %548 = dma.done.wait %s81_s26, 16 }
  0x1c   : > { %549 = vsyncadd %s81_s26, 4294967280  ;;  %s80_s25 = sadd.s32 1, %s558_s25  }
  0x1d   : > { %p77_p1 = scmp.ge.s32.totalorder %s80_s25, 16  }
  0x1e   :  { %v87_v2 = vld [vmem:[%s676_s2 + $0x8] sm:$0xff] (%p77_p1)  ;;  %v86_v3 = vld [vmem:[%s676_s2] sm:$0xff] (%p77_p1)  ;;  %v562_v4 = vmov (%p77_p1), 0   ;;  %vm102_vm1 = vcmask (%p77_p1), 31744   ;;  %v90_v17 = vlaneseq (%p77_p1)  ;;  %vm254_vm9 = vcmask (%p77_p1), 48168   ;;  %s564_s2 = smov (%p77_p1), 124  }
  0x1f   :  { %79 = sbr.rel (!%p77_p1) target bundleno = 26 (0x1a), region = 114  ;;  %464 = vset.pattern.permute.xlu0 (%p77_p1), %v562_v4  ;;  %465 = vset.pattern.permute.xlu1 (%p77_p1), %v562_v4  ;;  %v85_v5 = vld [vmem:[%s675_s1 + $0x8] sm:$0xff] (%p77_p1)  ;;  %v612_v7 = vld [vmem:[#allocation2] sm:$0xff] (%p77_p1)  ;;  %vm234_vm10 = vcmask (%p77_p1), 39968   ;;  %s565_s8 = smov (%p77_p1), [#allocation8]  }
  0x20   :  { %96 = vperm.xlu0 (%p77_p1), %464, %v87_v2   ;;  %93 = vperm.xlu1 (%p77_p1), %465, %v86_v3   ;;  %v610_v6 = vld [vmem:[#allocation2 + $0x8] sm:$0xff] (%p77_p1)  ;;  %v84_v9 = vld [vmem:[%s675_s1] sm:$0xff] (%p77_p1)  ;;  %v124_v15 = vsel (%p77_p1), %vm102_vm1, %v85_v5, -inf  ;;  %v91_v18 = vand.u32 (%p77_p1), 127, %v90_v17  ;;  %v215_v3 = vmax.f32 (%p77_p1), %v612_v7, 1e-30 }
  0x21   :  { %v174_v8 = vsub.f32 (%p77_p1), %v85_v5, %v610_v6  ;;  %v173_v11 = vsub.f32 (%p77_p1), %v84_v9, %v612_v7  ;;  %v121_v16 = vsel (%p77_p1), %vm102_vm1, %v84_v9, -inf  ;;  %v216_v61 = vmax.f32 (%p77_p1), %v610_v6, 1e-30  ;;  %s563_s1 = smov (%p77_p1), 123   ;;  %s285_s9 = sshll.u32 (%p77_p1), %s565_s8, 4  ;;  %s286_s9 = int_to_ptr.vmem [resolvable:$true] %s285_s9 }
  0x22   :  { %s287_s12 = sshll.u32 (%p77_p1), %s678_s4, 4  ;;  %s288_s12 = int_to_ptr.hbm [resolvable:$true] %s287_s12 }
  0x23   :  { %v176_v10 = vmul.f32 (%p77_p1), %v174_v8, %v174_v8  ;;  %v175_v13 = vmul.f32 (%p77_p1), %v173_v11, %v173_v11 }
  0x25   :  { %v180_v12 = vsel %vm102_vm1, %v176_v10, 0.0  ;;  %v177_v14 = vsel %vm102_vm1, %v175_v13, 0.0 }
  0x26   :  { %181 = vadd.xlane.f32.xlu2 %v180_v12 }
  0x2e   :  { %178 = vadd.xlane.f32.xlu2 %v177_v14 }
  0x4a   :  { %125 = vmax.xlane.f32.xlu0 %v124_v15  ;;  %122 = vmax.xlane.f32.xlu1 %v121_v16 }
  0x92   :  { %v97_v19 = vpop.permute.xlu0 %96  ;;  %v94_v20 = vpop.permute.xlu1 %93 }
  0x93   :  { %vm99_vm2 = vcmp.eq.s32.totalorder %v91_v18, %v97_v19  ;;  %vm98_vm3 = vcmp.eq.s32.totalorder %v91_v18, %v94_v20 }
  0x94   :  { %v101_v21 = vsel %vm99_vm2, %v85_v5, 0.0  ;;  %v100_v23 = vsel %vm98_vm3, %v84_v9, 0.0 }
  0x95   :  { %v106_v22 = vsel %vm102_vm1, %v101_v21, 0.0  ;;  %v103_v24 = vsel %vm102_vm1, %v100_v23, 0.0 }
  0x96   :  { %107 = vadd.xlane.f32.xlu2 %v106_v22 }
  0x99   :  { %v182_v35 = vpop.xlane.xlu2 %181 }
  0x9a   :  { %vm202_vm4 = vcmp.eq.f32.partialorder %v182_v35, inf  ;;  %v205_v50 = vand.u32 2147483648, %v182_v35  ;;  %vm204_vm5 = vcmp.eq.f32.partialorder %v182_v35, 0.0 }
  0x9e   :  { %104 = vadd.xlane.f32.xlu2 %v103_v24 }
  0xa1   :  { %v179_v36 = vpop.xlane.xlu2 %178 }
  0xa2   :  { %vm190_vm6 = vcmp.eq.f32.partialorder %v179_v36, inf  ;;  %v193_v54 = vand.u32 2147483648, %v179_v36  ;;  %vm192_vm7 = vcmp.eq.f32.partialorder %v179_v36, 0.0 }
  0xbd   :  { %v626_v25 = vpop.xlane.xlu0 %125  ;;  %v628_v26 = vpop.xlane.xlu1 %122 }
  0xbe   :  { %v128_v27 = vsub.f32 %v85_v5, %v626_v25  ;;  %v127_v28 = vsub.f32 %v84_v9, %v628_v26 }
  0xc0   :  { %v131_v29 = vmul.f32 1.442695, %v128_v27  ;;  %v129_v30 = vmul.f32 1.442695, %v127_v28 }
  0xc2   :  { %466 = vpow2.f32 %v131_v29 }
  0xc3   :  { %468 = vpow2.f32 %v129_v30 }
  0xc4   :  { %470 = vrsqrt.f32 %v182_v35 }
  0xc5   :  { %472 = vrsqrt.f32 %v179_v36 }
  0xc6   :  { %474 = vlog2.f32 %v216_v61 }
  0xc8   :  { %v467_v31 = vpop.eup %466 }
  0xc9   :  { %v136_v32 = vsel %vm102_vm1, %v467_v31, 0.0  ;;  %v469_v33 = vpop.eup %468 }
  0xca   :  { %137 = vadd.xlane.f32.xlu2 %v136_v32  ;;  %v133_v34 = vsel %vm102_vm1, %v469_v33, 0.0  ;;  %v471_v37 = vpop.eup %470  ;;  %v110_v32 = vshrl.u32 %v90_v17, 7 }
  0xcb   :  { %v196_v38 = vmul.f32 %v471_v37, %v182_v35  ;;  %v473_v39 = vpop.eup %472 }
  0xcc   :  { %v184_v41 = vmul.f32 %v473_v39, %v179_v36  ;;  %v475_v10 = vpop.eup %474 }
  0xcd   :  { %v197_v40 = vmul.f32 %v471_v37, %v196_v38  ;;  %v222_v14 = vmul.f32 0.6931472, %v475_v10 }
  0xce   :  { %v185_v43 = vmul.f32 %v473_v39, %v184_v41 }
  0xcf   :  { %v198_v42 = vmul.f32 0.5, %v197_v40  ;;  %v111_v40 = vadd.s32 8, %v110_v32 }
  0xd0   :  { %v186_v45 = vmul.f32 0.5, %v185_v43 }
  0xd1   :  { %v199_v44 = vsub.f32 1.5, %v198_v42  ;;  %vm116_vm8 = vcmp.lt.s32.totalorder %v111_v40, 10 }
  0xd2   :  { %134 = vadd.xlane.f32.xlu2 %v133_v34  ;;  %v187_v47 = vsub.f32 1.5, %v186_v45 }
  0xd3   :  { %v200_v46 = vmul.f32 %v471_v37, %v199_v44 }
  0xd4   :  { %v188_v49 = vmul.f32 %v473_v39, %v187_v47 }
  0xd5   :  { %v201_v48 = vmul.f32 %v200_v46, %v182_v35 }
  0xd6   :  { %v189_v52 = vmul.f32 %v188_v49, %v179_v36 }
  0xd7   :  { %v203_v51 = vsel %vm202_vm4, %v182_v35, %v201_v48 }
  0xd8   :  { %v206_v53 = vsel %vm204_vm5, %v205_v50, %v203_v51  ;;  %v191_v56 = vsel %vm190_vm6, %v179_v36, %v189_v52  ;;  %v425_v51 = vsel %vm116_vm8, 1.0, %v561_v0 }
  0xd9   :  { %v208_v55 = vsub.f32 0.0, %v206_v53  ;;  %v194_v57 = vsel %vm192_vm7, %v193_v54, %v191_v56 }
  0xda   :  { %v207_v60 = vsub.f32 0.0, %v194_v57 }
  0xdb   :  { %v210_v58 = vmul.f32 %v208_v55, %v610_v6 }
  0xdc   :  { %v209_v1 = vmul.f32 %v207_v60, %v612_v7 }
  0xdd   :  { %v213_v62 = vmul.f32 1.442695, %v210_v58 }
  0xde   :  { %v211_v5 = vmul.f32 1.442695, %v209_v1 }
  0xdf   :  { %476 = vpow2.f32 %v213_v62 }
  0xe0   :  { %478 = vlog2.f32 %v215_v3 }
  0xe1   :  { %480 = vpow2.f32 %v211_v5 }
  0xe5   :  { %v477_v12 = vpop.eup %476 }
  0xe6   :  { %v218_v16 = vsub.f32 1.0, %v477_v12  ;;  %v479_v18 = vpop.eup %478 }
  0xe7   :  { %v481_v20 = vpop.eup %480  ;;  %v220_v28 = vmul.f32 0.6931472, %v479_v18 }
  0xe8   :  { %v224_v23 = vmul.f32 %v222_v14, %v218_v16  ;;  %v217_v30 = vsub.f32 1.0, %v481_v20  ;;  %v231_v16 = vld [vmem:[#allocation4] sm:$0x1]  ;;  %v251_v20 = vld [vmem:[#allocation5] sm:$0x1] }
  0xea   :  { %v227_v31 = vmul.f32 1.442695, %v224_v23  ;;  %v223_v34 = vmul.f32 %v220_v28, %v217_v30 }
  0xec   :  { %v225_v43 = vmul.f32 1.442695, %v223_v34 }
 0x109   :  { %v635_v59 = vpop.xlane.xlu2 %107 }
 0x10a   :  { %v640_v63 = vsub.f32 %v635_v59, %v610_v6  ;;  %v140_v2 = vsub.f32 %v635_v59, %v626_v25 }
 0x10c   :  { %v148_v4 = vsub.f32 %v640_v63, %v626_v25  ;;  %v143_v9 = vmul.f32 1.442695, %v140_v2 }
 0x10e   :  { %v151_v6 = vmul.f32 1.442695, %v148_v4  ;;  %482 = vpow2.f32 %v143_v9 }
 0x110   :  { %484 = vpow2.f32 %v151_v6 }
 0x111   :  { %v648_v8 = vpop.xlane.xlu2 %104 }
 0x112   :  { %v652_v11 = vsub.f32 %v648_v8, %v612_v7  ;;  %v139_v13 = vsub.f32 %v648_v8, %v628_v26 }
 0x114   :  { %v147_v15 = vsub.f32 %v652_v11, %v628_v26  ;;  %v141_v19 = vmul.f32 1.442695, %v139_v13  ;;  %v483_v21 = vpop.eup %482 }
 0x116   :  { %v149_v22 = vmul.f32 1.442695, %v147_v15  ;;  %v485_v27 = vpop.eup %484 }
 0x13d   :  { %v138_v7 = vpop.xlane.xlu2 %137 }
 0x13e   :  { %v154_v24 = vsub.f32 %v138_v7, %v483_v21  ;;  %486 = vlog2.f32 %v138_v7 }
 0x13f   :  { %488 = vpow2.f32 %v141_v19 }
 0x140   :  { %v156_v29 = vadd.f32 %v485_v27, %v154_v24  ;;  %490 = vpow2.f32 %v149_v22 }
 0x142   :  { %492 = vlog2.f32 %v156_v29 }
 0x143   :  { %494 = vpow2.f32 %v227_v31 }
 0x144   :  { %v487_v33 = vpop.eup %486 }
 0x145   :  { %v489_v35 = vpop.eup %488  ;;  %v160_v36 = vmul.f32 0.6931472, %v487_v33  ;;  %v135_v37 = vpop.xlane.xlu2 %134 }
 0x146   :  { %v153_v38 = vsub.f32 %v135_v37, %v489_v35  ;;  %496 = vlog2.f32 %v135_v37  ;;  %v491_v39 = vpop.eup %490 }
 0x147   :  { %v162_v41 = vadd.f32 %v160_v36, %v626_v25 }
 0x148   :  { %v493_v42 = vpop.eup %492  ;;  %v155_v44 = vadd.f32 %v491_v39, %v153_v38 }
 0x149   :  { %v166_v45 = vmul.f32 0.6931472, %v493_v42  ;;  %v172_v46 = vsub.f32 %v162_v41, %v635_v59  ;;  %v495_v17 = vpop.eup %494 }
 0x14a   :  { %498 = vlog2.f32 %v155_v44 }
 0x14b   :  { %v168_v47 = vadd.f32 %v166_v45, %v626_v25  ;;  %500 = vpow2.f32 %v225_v43  ;;  %v230_v49 = vmul.f32 %v495_v17, %v172_v46 }
 0x14c   :  { %v497_v48 = vpop.eup %496 }
 0x14d   :  { %v158_v50 = vmul.f32 0.6931472, %v497_v48  ;;  %v170_v52 = vsub.f32 %v168_v47, %v640_v63  ;;  %v253_v55 = vmul.f32 %v425_v51, %v230_v49 }
 0x14f   :  { %v161_v53 = vadd.f32 %v158_v50, %v628_v26  ;;  %v233_v59 = vmul.f32 %v425_v51, %v170_v52  ;;  %v256_v0 = vsel %vm254_vm9, %v253_v55, 0.0 }
 0x150   :  { %v499_v54 = vpop.eup %498 }
 0x151   :  { %v164_v56 = vmul.f32 0.6931472, %v499_v54  ;;  %v171_v57 = vsub.f32 %v161_v53, %v648_v8  ;;  %v501_v58 = vpop.eup %500  ;;  %v236_v2 = vsel %vm234_vm10, %v233_v59, 0.0 }
 0x153   :  { %v167_v25 = vadd.f32 %v164_v56, %v628_v26  ;;  %v229_v60 = vmul.f32 %v501_v58, %v171_v57 }
 0x155   :  { %v169_v61 = vsub.f32 %v167_v25, %v652_v11  ;;  %v255_v62 = vsel %vm254_vm9, %v229_v60, 0.0 }
 0x156   :  { %v257_v1 = vadd.f32 %v256_v0, %v255_v62 }
 0x157   :  { %v235_v63 = vsel %vm234_vm10, %v169_v61, 0.0 }
 0x158   :  { %v258_v3 = vrot.slane %v257_v1, 4  ;;  %v237_v4 = vadd.f32 %v236_v2, %v235_v63 }
 0x15a   :  { %v259_v5 = vadd.f32 %v258_v3, %v257_v1  ;;  %v238_v9 = vrot.slane %v237_v4, 4 }
 0x15c   :  { %v260_v10 = vrot.slane %v259_v5, 2  ;;  %v239_v8 = vadd.f32 %v238_v9, %v237_v4 }
 0x15e   :  { %v261_v6 = vadd.f32 %v260_v10, %v259_v5  ;;  %v240_v12 = vrot.slane %v239_v8, 2 }
 0x160   :  { %v262_v13 = vrot.slane %v261_v6, 1  ;;  %v241_v14 = vadd.f32 %v240_v12, %v239_v8 }
 0x162   :  { %v263_v26 = vadd.f32 %v262_v13, %v261_v6  ;;  %v242_v15 = vrot.slane %v241_v14, 1 }
 0x164   :  { %265 = vrot.lane.b32.xlu0 %v263_v26, %s563_s1  ;;  %v243_v11 = vadd.f32 %v242_v15, %v241_v14 }
 0x166   :  { %245 = vrot.lane.b32.xlu2 %v243_v11, %s564_s2 }
 0x1c0   :  { %v246_v18 = vpop.permute.xlu2 %245 }
 0x1c1   :  { %v248_v19 = vadd.f32 %v246_v18, %v231_v16 }
 0x1c3   :  { %250 = vst.msk [vmem:[#allocation4] sm:$0x1] %vm26_vm0, %v248_v19 }
 0x1ca   :  { %v275_v23 = vld [vmem:[#allocation4] sm:$0x1] }
 0x1cb   :  { %v276_v27 = vmul.f32 0.3, %v275_v23 }
 0x1d6   :  { %v266_v21 = vpop.permute.xlu0 %265 }
 0x1d7   :  { %v268_v22 = vadd.f32 %v266_v21, %v251_v20 }
 0x1d9   :  { %269 = vst.msk [vmem:[#allocation5] sm:$0x1] %vm26_vm0, %v268_v22 }
 0x1e0   :  { %v273_v7 = vld [vmem:[#allocation5] sm:$0x1] }
 0x1e1   :  { %v274_v24 = vmul.f32 0.7, %v273_v7 }
 0x1e3   :  { %v277_v28 = vadd.f32 %v276_v27, %v274_v24 }
 0x1e5   :  { %v278_v29 = vmul.f32 0.1, %v277_v28 }
 0x1e7   :  { %279 = vst.msk [vmem:[#allocation8] sm:$0x1] %vm26_vm0, %v278_v29 }
 0x1e8   :  { %290 = dma.vmem_to_hbm [thread:$0]  %s286_s9, 16, %s288_s12, [#allocation9]  }
 0x1e9   :  { %550 = dma.done.wait [#allocation9], 16  }
 0x1ea   :  { %551 = vsyncadd [#allocation9], 4294967280 }
 0x1eb   :  { %295 = vsyncpa [#allocation9], 1 }
 0x1ec   :  { %296 = vsyncmov [#allocation3] }
 0x1ef   :  { %s297_s13 = vpop.sfrf %296 }
 0x1f0   :  { %p426_p2 = scmp.ne.s32.totalorder %s297_s13, 0 }
 0x1f2   :  { %301 = shalt.err (%p426_p2)  }
 0x1f3   :  { %303 = vsyncmov [#allocation3 + $0x1] }
 0x1f6   :  { %s304_s14 = vpop.sfrf %303 }
 0x1f7   :  { %p427_p3 = scmp.ne.s32.totalorder %s304_s14, 0 }
 0x1f9   :  { %308 = shalt.err (%p427_p3)  }
 0x1fa   :  { %310 = vsyncmov [#allocation3 + $0x2] }
 0x1fd   :  { %s311_s4 = vpop.sfrf %310 }
 0x1fe   :  { %p428_p4 = scmp.ne.s32.totalorder %s311_s4, 0 }
 0x200   :  { %315 = shalt.err (%p428_p4)  }
 0x201   :  { %317 = vsyncmov [#allocation3 + $0x3] }
 0x204   :  { %s318_s15 = vpop.sfrf %317 }
 0x205   :  { %p429_p5 = scmp.ne.s32.totalorder %s318_s15, 0 }
 0x207   :  { %322 = shalt.err (%p429_p5)  }
 0x208   :  { %324 = vsyncmov [#allocation3 + $0x4] }
 0x20b   :  { %s325_s16 = vpop.sfrf %324 }
 0x20c   :  { %p430_p6 = scmp.ne.s32.totalorder %s325_s16, 0 }
 0x20e   :  { %329 = shalt.err (%p430_p6)  }
 0x20f   :  { %331 = vsyncmov [#allocation3 + $0x5] }
 0x212   :  { %s332_s17 = vpop.sfrf %331 }
 0x213   :  { %p431_p7 = scmp.ne.s32.totalorder %s332_s17, 0 }
 0x215   :  { %336 = shalt.err (%p431_p7)  }
 0x216   :  { %338 = vsyncmov [#allocation3 + $0x6] }
 0x219   :  { %s339_s18 = vpop.sfrf %338 }
 0x21a   :  { %p432_p8 = scmp.ne.s32.totalorder %s339_s18, 0 }
 0x21c   :  { %343 = shalt.err (%p432_p8)  }
 0x21d   :  { %345 = vsyncmov [#allocation3 + $0x7] }
 0x220   :  { %s346_s19 = vpop.sfrf %345 }
 0x221   :  { %p433_p9 = scmp.ne.s32.totalorder %s346_s19, 0 }
 0x223   :  { %350 = shalt.err (%p433_p9)  }
 0x224   :  { %352 = vsyncmov [#allocation3 + $0x8] }
 0x227   :  { %s353_s0 = vpop.sfrf %352 }
 0x228   :  { %p434_p10 = scmp.ne.s32.totalorder %s353_s0, 0 }
 0x22a   :  { %357 = shalt.err (%p434_p10)  }
 0x22b   :  { %359 = vsyncmov [#allocation3 + $0x9] }
 0x22e   :  { %s360_s20 = vpop.sfrf %359 }
 0x22f   :  { %p435_p11 = scmp.ne.s32.totalorder %s360_s20, 0 }
 0x231   :  { %364 = shalt.err (%p435_p11)  }
 0x232   :  { %366 = vsyncmov [#allocation3 + $0xa] }
 0x235   :  { %s367_s21 = vpop.sfrf %366 }
 0x236   :  { %p436_p12 = scmp.ne.s32.totalorder %s367_s21, 0 }
 0x238   :  { %371 = shalt.err (%p436_p12)  }
 0x239   :  { %373 = vsyncmov [#allocation3 + $0xb] }
 0x23c   :  { %s374_s22 = vpop.sfrf %373 }
 0x23d   :  { %p437_p13 = scmp.ne.s32.totalorder %s374_s22, 0 }
 0x23f   :  { %378 = shalt.err (%p437_p13)  }
 0x240   :  { %380 = vsyncmov [#allocation3 + $0xc] }
 0x243   :  { %s381_s23 = vpop.sfrf %380 }
 0x244   :  { %p438_p0 = scmp.ne.s32.totalorder %s381_s23, 0 }
 0x246   :  { %385 = shalt.err (%p438_p0)  }
 0x247   :  { %387 = vsyncmov [#allocation3 + $0xd] }
 0x24a   :  { %s388_s24 = vpop.sfrf %387 }
 0x24b   :  { %p439_p1 = scmp.ne.s32.totalorder %s388_s24, 0 }
 0x24d   :  { %392 = shalt.err (%p439_p1)  }
 0x24e   :  { %394 = vsyncmov [#allocation3 + $0xe] }
 0x251   :  { %s395_s25 = vpop.sfrf %394 }
 0x252   :  { %p440_p2 = scmp.ne.s32.totalorder %s395_s25, 0 }
 0x254   :  { %399 = shalt.err (%p440_p2)  }
 0x255   :  { %401 = vsyncmov [#allocation3 + $0xf] }
 0x258   :  { %s402_s26 = vpop.sfrf %401 }
 0x259   :  { %p441_p3 = scmp.ne.s32.totalorder %s402_s26, 0 }
 0x25b   :  { %406 = shalt.err (%p441_p3)  }

</bundles_post_ra>
